<compile_context>
chip_gen: v6e
topology: v6e:2x2x1
jax: 0.10.0
libtpu: 0.0.40
codegen_flags: <defaults>
</compile_context>

<pallas_src>
import jax
import jax.numpy as jnp
import numpy as np
from jax.experimental import pallas as pl
from jax.experimental.pallas import tpu as pltpu


def _round_up(x, m):
    return (x + m - 1) // m * m


# ----------------------------- Pallas kernel ---------------------------------
def multivae_kernel(x_ref, w_enc_ref, w_mvh_ref, w_d2_ref, bias_ref, out_ref):
    f32 = jnp.float32
    bf16 = jnp.bfloat16

    hidden = w_enc_ref.shape[1]
    z2 = w_mvh_ref.shape[1] - hidden        # 2 * z_dim  (columns = [mu | var | hd_pre])
    ow = w_d2_ref.shape[1]                  # lane-padded output width (multiple of 128)

    x = x_ref[...].astype(bf16)             # (TB, F), cast in-kernel (no wrapper HBM pass)

    biases = bias_ref[...]                  # (8, >=ow) packed f32 bias tile
    b_enc = biases[0:1, :hidden]            # bs + bu[head]
    b_mvh = biases[1:2, :z2 + hidden]       # [bmu | bvar | bmu@Wd1 + bd1]
    b_d2 = biases[2:3, :ow]                 # bd2 zero-padded to ow

    # ---- encoder (fused shared + head-specific weights) ----
    h = jnp.maximum(jnp.dot(x, w_enc_ref[...], preferred_element_type=f32) + b_enc, 0.0)

    # ---- fused [mu | var | hd_pre] head (eval mode: z = mu, decoder L1 folded in) ----
    mvh = jnp.dot(h.astype(bf16), w_mvh_ref[...], preferred_element_type=f32) + b_mvh
    mu_var = mvh[:, :z2]                    # (TB, 2*z_dim) = [z_mu | z_var]
    hd = jnp.maximum(mvh[:, z2:], 0.0)      # relu(z_mu @ Wd1 + bd1)

    # ---- decoder layer 2 (full 128-lane column; padded weight cols are zero) ----
    pred = jnp.dot(hd.astype(bf16), w_d2_ref[...], preferred_element_type=f32) + b_d2

    # ---- stores: one unmasked full-width bf16 store, then a 4-lane overwrite ----
    out_ref[...] = pred.astype(out_ref.dtype)
    out_ref[:, ow - z2:] = mu_var.astype(out_ref.dtype)


# ----------------------------- wrapper ---------------------------------------
def fuse_params(params, head_id):
    """One-time per-(params, head_id) preprocessing (hoisted out of the batch path)."""
    hidden = params["Ws"].shape[1]
    z_dim = params["Wmu"].shape[1]
    out_dim = params["Wd2"].shape[1]

    # packed output width: [pred (out_dim, zero-padded) | ... | mu (z) | var (z)]
    out_w = _round_up(out_dim, 128)
    if out_w - out_dim < 2 * z_dim:
        out_w += 128

    bf16 = jnp.bfloat16
    # head_id is a static Python int -> static indexing, no runtime gather.
    w_enc = jnp.concatenate([params["Ws"], params["Wu"][head_id]], axis=0).astype(bf16)
    # eval-mode z == z_mu: fold decoder layer 1 through the mu head.
    w_hd = params["Wmu"] @ params["Wd1"]
    b_hd = params["bmu"] @ params["Wd1"] + params["bd1"]
    w_mvh = jnp.concatenate([params["Wmu"], params["Wvar"], w_hd], axis=1).astype(bf16)
    w_d2 = jnp.pad(params["Wd2"], ((0, 0), (0, out_w - out_dim))).astype(bf16)

    # all biases packed into one (8, bw) f32 tile (one small DMA)
    bw = max(out_w, _round_up(hidden + 2 * z_dim, 128))
    bias = jnp.zeros((8, bw), jnp.float32)
    bias = bias.at[0, :hidden].set((params["bs"] + params["bu"][head_id])[0])
    bias = bias.at[1, :2 * z_dim + hidden].set(
        jnp.concatenate([params["bmu"], params["bvar"], b_hd], axis=1)[0])
    bias = bias.at[2, :out_dim].set(params["bd2"][0])

    return dict(w_enc=w_enc, w_mvh=w_mvh, w_d2=w_d2, bias=bias,
                z_dim=z_dim, out_dim=out_dim, out_w=out_w)


def multivae_forward(x, fused):
    """Forward pass of multiVAE (eval mode).  Returns (predicted, z_mu, z_var) in bf16."""
    B, F = x.shape
    z_dim, out_dim, out_w = fused["z_dim"], fused["out_dim"], fused["out_w"]

    # Batch tile: aim for >=2 grid steps (v7x 2 TensorCores share the "parallel" axis),
    # cap at 2048 rows to amortize per-step overhead on single-TC v5e/v6e.
    TB = max(8, min(_round_up(pl.cdiv(B, 2), 16), 2048))
    if TB >= B:
        TB = _round_up(B, 8)       # single block; equals (8-rounded) full batch
    grid = (pl.cdiv(B, TB),)       # partial last block handled by Pallas (no x padding)

    slab = pl.pallas_call(
        multivae_kernel,
        out_shape=jax.ShapeDtypeStruct((B, out_w), jnp.bfloat16),
        grid=grid,
        in_specs=[
            pl.BlockSpec((TB, F), lambda i: (i, 0)),                 # x (batch-tiled, f32)
            pl.BlockSpec(fused["w_enc"].shape, lambda i: (0, 0)),    # fused encoder W
            pl.BlockSpec(fused["w_mvh"].shape, lambda i: (0, 0)),    # fused [Wmu|Wvar|Wmu@Wd1]
            pl.BlockSpec(fused["w_d2"].shape, lambda i: (0, 0)),     # decoder W2 (lane-padded)
            pl.BlockSpec(fused["bias"].shape, lambda i: (0, 0)),     # packed bias tile
        ],
        out_specs=pl.BlockSpec((TB, out_w), lambda i: (i, 0)),
        compiler_params=pltpu.CompilerParams(
            dimension_semantics=("parallel",)),
    )(x, fused["w_enc"], fused["w_mvh"], fused["w_d2"], fused["bias"])

    # NOTE: consumers that can use the packed slab should do so; these slices are cheap
    # (39/128 lanes, bf16) and fuse away under jit.
    pred = slab[:, :out_dim]
    z_mu = slab[:, out_w - 2 * z_dim:out_w - z_dim]
    z_var = slab[:, out_w - z_dim:]
    return pred, z_mu, z_var


# pure-JAX f32 reference (same math, outside Pallas) for a sanity check
def multivae_reference(x, head_id, params, *, n_shared=3, n_other=4):
    xs = x[:, :n_shared]
    xu = x[:, n_shared:n_shared + n_other]
    h = jnp.maximum(xs @ params["Ws"] + params["bs"]
                    + xu @ params["Wu"][head_id] + params["bu"][head_id], 0.0)
    z_mu = h @ params["Wmu"] + params["bmu"]
    z_var = h @ params["Wvar"] + params["bvar"]
    hd = jnp.maximum(z_mu @ params["Wd1"] + params["bd1"], 0.0)
    pred = hd @ params["Wd2"] + params["bd2"]
    return pred, z_mu, z_var


# ----------------------------- param init ------------------------------------
def init_params(key, *, n_shared=3, n_other=4, z_dim=2, n_labels=8, hidden=32):
    ks = jax.random.split(key, 10)
    f = jnp.float32
    out_dim = n_shared + n_labels * n_other
    return {
        "Ws":   0.3 * jax.random.normal(ks[0], (n_shared, hidden), f),
        "bs":   0.1 * jax.random.normal(ks[1], (1, hidden), f),
        "Wu":   0.3 * jax.random.normal(ks[2], (n_labels, n_other, hidden), f),
        "bu":   0.1 * jax.random.normal(ks[3], (n_labels, 1, hidden), f),
        "Wmu":  0.3 * jax.random.normal(ks[4], (hidden, z_dim), f),
        "bmu":  jnp.zeros((1, z_dim), f),
        "Wvar": 0.3 * jax.random.normal(ks[5], (hidden, z_dim), f),
        "bvar": jnp.zeros((1, z_dim), f),
        "Wd1":  0.3 * jax.random.normal(ks[6], (z_dim, hidden), f),
        "bd1":  0.1 * jax.random.normal(ks[7], (1, hidden), f),
        "Wd2":  0.3 * jax.random.normal(ks[8], (hidden, out_dim), f),
        "bd2":  0.1 * jax.random.normal(ks[9], (1, out_dim), f),
    }


# ----------------------------- main -------------------------------------------
if __name__ == "__main__":
    n_shared, n_other, z_dim, n_labels, hidden = 3, 4, 2, 8, 32
    B = 8
    head_id = 2

    key = jax.random.PRNGKey(0)
    kx, kp = jax.random.split(key)
    x = jax.random.normal(kx, (B, n_shared + n_other), jnp.float32)   # (8, 7)
    params = init_params(kp, n_shared=n_shared, n_other=n_other,
                         z_dim=z_dim, n_labels=n_labels, hidden=hidden)

    fused = fuse_params(params, head_id)          # hoisted: once per (params, head_id)
    pred, z_mu, z_var = multivae_forward(x, fused)
    jax.block_until_ready((pred, z_mu, z_var))

    pred_r, mu_r, var_r = multivae_reference(x, head_id, params,
                                             n_shared=n_shared, n_other=n_other)

    # bf16 MXU inputs + bf16 output slab -> compare vs f32 reference with bf16 tolerance.
    to_f32 = lambda a: np.asarray(a).astype(np.float32)
    np.testing.assert_allclose(to_f32(z_mu), np.asarray(mu_r), rtol=5e-2, atol=5e-2)
    np.testing.assert_allclose(to_f32(z_var), np.asarray(var_r), rtol=5e-2, atol=5e-2)
    np.testing.assert_allclose(to_f32(pred), np.asarray(pred_r), rtol=5e-2, atol=5e-2)

    assert pred.shape == (B, n_shared + n_labels * n_other)
    assert z_mu.shape == (B, z_dim) and z_var.shape == (B, z_dim)
    print("KERNEL_OK")
</pallas_src>

<mosaic_0001>
module attributes {stable_mosaic.version = 11 : i64} {
  func.func @multivae_kernel(%arg0: i32, %arg1: memref<8x7xf32, #tpu.memory_space<vmem>>, %arg2: memref<7x32xbf16, #tpu.memory_space<vmem>>, %arg3: memref<32x36xbf16, #tpu.memory_space<vmem>>, %arg4: memref<32x128xbf16, #tpu.memory_space<vmem>>, %arg5: memref<8x128xf32, #tpu.memory_space<vmem>>, %arg6: memref<8x128xbf16, #tpu.memory_space<vmem>>) attributes {dimension_semantics = [#tpu.dimension_semantics<parallel>], iteration_bounds = array<i64: 1>, scalar_prefetch = 0 : i64, scratch_operands = 0 : i64, tpu.core_type = #tpu.core_type<tc>, window_params = [{transform_indices = @transform_0, window_bounds = array<i64: 8, 7>}, {pipeline_mode = #tpu.pipeline_mode<synchronous>, transform_indices = @transform_1, window_bounds = array<i64: 7, 32>}, {pipeline_mode = #tpu.pipeline_mode<synchronous>, transform_indices = @transform_2, window_bounds = array<i64: 32, 36>}, {pipeline_mode = #tpu.pipeline_mode<synchronous>, transform_indices = @transform_3, window_bounds = array<i64: 32, 128>}, {pipeline_mode = #tpu.pipeline_mode<synchronous>, transform_indices = @transform_4, window_bounds = array<i64: 8, 128>}, {transform_indices = @transform_5, window_bounds = array<i64: 8, 128>}]} {
    %c0 = arith.constant 0 : index
    %c0_0 = arith.constant 0 : index
    %0 = vector.load %arg1[%c0, %c0_0] : memref<8x7xf32, #tpu.memory_space<vmem>>, vector<8x7xf32>
    %1 = arith.truncf %0 : vector<8x7xf32> to vector<8x7xbf16>
    %c0_1 = arith.constant 0 : index
    %c0_2 = arith.constant 0 : index
    %2 = vector.load %arg5[%c0_1, %c0_2] : memref<8x128xf32, #tpu.memory_space<vmem>>, vector<8x128xf32>
    %3 = vector.extract_strided_slice %2 {offsets = [0, 0], sizes = [1, 32], strides = [1, 1]} : vector<8x128xf32> to vector<1x32xf32>
    %4 = vector.extract_strided_slice %2 {offsets = [1, 0], sizes = [1, 36], strides = [1, 1]} : vector<8x128xf32> to vector<1x36xf32>
    %5 = vector.extract_strided_slice %2 {offsets = [2, 0], sizes = [1, 128], strides = [1, 1]} : vector<8x128xf32> to vector<1x128xf32>
    %c0_3 = arith.constant 0 : index
    %c0_4 = arith.constant 0 : index
    %6 = vector.load %arg2[%c0_3, %c0_4] : memref<7x32xbf16, #tpu.memory_space<vmem>>, vector<7x32xbf16>
    %cst = arith.constant dense<0.000000e+00> : vector<8x32xf32>
    %7 = tpu.matmul %1, %6, %cst {dimension_numbers = #tpu.dot_dimension_numbers<[1], [0], [0], [1], [0, 0, 1, 1], [], []>} : vector<8x7xbf16>, vector<7x32xbf16>, vector<8x32xf32> -> vector<8x32xf32>
    %8 = vector.broadcast %3 : vector<1x32xf32> to vector<8x32xf32>
    %9 = arith.addf %7, %8 : vector<8x32xf32>
    %cst_5 = arith.constant 0.000000e+00 : f32
    %10 = vector.broadcast %cst_5 : f32 to vector<8x32xf32>
    %11 = arith.maximumf %9, %10 : vector<8x32xf32>
    %12 = arith.truncf %11 : vector<8x32xf32> to vector<8x32xbf16>
    %c0_6 = arith.constant 0 : index
    %c0_7 = arith.constant 0 : index
    %13 = vector.load %arg3[%c0_6, %c0_7] : memref<32x36xbf16, #tpu.memory_space<vmem>>, vector<32x36xbf16>
    %cst_8 = arith.constant dense<0.000000e+00> : vector<8x36xf32>
    %14 = tpu.matmul %12, %13, %cst_8 {dimension_numbers = #tpu.dot_dimension_numbers<[1], [0], [0], [1], [0, 0, 1, 1], [], []>} : vector<8x32xbf16>, vector<32x36xbf16>, vector<8x36xf32> -> vector<8x36xf32>
    %15 = vector.broadcast %4 : vector<1x36xf32> to vector<8x36xf32>
    %16 = arith.addf %14, %15 : vector<8x36xf32>
    %17 = vector.extract_strided_slice %16 {offsets = [0, 0], sizes = [8, 4], strides = [1, 1]} : vector<8x36xf32> to vector<8x4xf32>
    %18 = vector.extract_strided_slice %16 {offsets = [0, 4], sizes = [8, 32], strides = [1, 1]} : vector<8x36xf32> to vector<8x32xf32>
    %cst_9 = arith.constant 0.000000e+00 : f32
    %19 = vector.broadcast %cst_9 : f32 to vector<8x32xf32>
    %20 = arith.maximumf %18, %19 : vector<8x32xf32>
    %21 = arith.truncf %20 : vector<8x32xf32> to vector<8x32xbf16>
    %c0_10 = arith.constant 0 : index
    %c0_11 = arith.constant 0 : index
    %22 = vector.load %arg4[%c0_10, %c0_11] : memref<32x128xbf16, #tpu.memory_space<vmem>>, vector<32x128xbf16>
    %cst_12 = arith.constant dense<0.000000e+00> : vector<8x128xf32>
    %23 = tpu.matmul %21, %22, %cst_12 {dimension_numbers = #tpu.dot_dimension_numbers<[1], [0], [0], [1], [0, 0, 1, 1], [], []>} : vector<8x32xbf16>, vector<32x128xbf16>, vector<8x128xf32> -> vector<8x128xf32>
    %24 = vector.broadcast %5 : vector<1x128xf32> to vector<8x128xf32>
    %25 = arith.addf %23, %24 : vector<8x128xf32>
    %26 = arith.truncf %25 : vector<8x128xf32> to vector<8x128xbf16>
    %c0_13 = arith.constant 0 : index
    %c0_14 = arith.constant 0 : index
    %27 = vector.load %arg6[%c0_13, %c0_14] : memref<8x128xbf16, #tpu.memory_space<vmem>>, vector<8x128xbf16>
    tpu.vector_store %arg6[%c0_13, %c0_14], %26 {strides = array<i32>} : memref<8x128xbf16, #tpu.memory_space<vmem>>, vector<8x128xbf16>,
    %28 = arith.truncf %17 : vector<8x4xf32> to vector<8x4xbf16>
    %c0_15 = arith.constant 0 : index
    %c124 = arith.constant 124 : index
    %29 = vector.load %arg6[%c0_15, %c124] : memref<8x128xbf16, #tpu.memory_space<vmem>>, vector<8x4xbf16>
    tpu.vector_store %arg6[%c0_15, %c124], %28 {strides = array<i32>} : memref<8x128xbf16, #tpu.memory_space<vmem>>, vector<8x4xbf16>,
    return
  }
  func.func @transform_0(%arg0: i32) -> (i32, i32) {
    %c0_i32 = arith.constant 0 : i32
    %c0_i32_0 = arith.constant 0 : i32
    return %arg0, %c0_i32 : i32, i32
  }
  func.func @transform_1(%arg0: i32) -> (i32, i32) {
    %c0_i32 = arith.constant 0 : i32
    %c0_i32_0 = arith.constant 0 : i32
    %c0_i32_1 = arith.constant 0 : i32
    return %c0_i32, %c0_i32_0 : i32, i32
  }
  func.func @transform_2(%arg0: i32) -> (i32, i32) {
    %c0_i32 = arith.constant 0 : i32
    %c0_i32_0 = arith.constant 0 : i32
    %c0_i32_1 = arith.constant 0 : i32
    return %c0_i32, %c0_i32_0 : i32, i32
  }
  func.func @transform_3(%arg0: i32) -> (i32, i32) {
    %c0_i32 = arith.constant 0 : i32
    %c0_i32_0 = arith.constant 0 : i32
    %c0_i32_1 = arith.constant 0 : i32
    return %c0_i32, %c0_i32_0 : i32, i32
  }
  func.func @transform_4(%arg0: i32) -> (i32, i32) {
    %c0_i32 = arith.constant 0 : i32
    %c0_i32_0 = arith.constant 0 : i32
    %c0_i32_1 = arith.constant 0 : i32
    return %c0_i32, %c0_i32_0 : i32, i32
  }
  func.func @transform_5(%arg0: i32) -> (i32, i32) {
    %c0_i32 = arith.constant 0 : i32
    %c0_i32_0 = arith.constant 0 : i32
    return %arg0, %c0_i32 : i32, i32
  }
}

</mosaic_0001>

<bundles_post_ra>
// kernel: tpu_custom_call.1
= control target key start
LH: loop header
LB: loop body
LE: loop exit
PB: predicated region body
PF: predicated region fallthrough
CT: control target
= control target key end

     0   :  { %10 = vsyncpa [#allocation3], 0  ;;  %s550_s0 = inlined_call_operand.hbm [shape: f32[8,7], index: 0, kind: input, shape index: {}]   ;;  %s551_s1 = inlined_call_operand.hbm [shape: bf16[7,32], index: 1, kind: input, shape index: {}]   ;;  %s552_s2 = inlined_call_operand.hbm [shape: bf16[32,36], index: 2, kind: input, shape index: {}]   ;;  %s553_s3 = inlined_call_operand.hbm [shape: bf16[32,128], index: 3, kind: input, shape index: {}]   ;;  %s554_s4 = inlined_call_operand.hbm [shape: f32[8,128], index: 4, kind: input, shape index: {}]   ;;  %s555_s5 = inlined_call_operand.hbm [shape: bf16[8,128], index: 5, kind: output, shape index: {}]  }
   0x1   :  { %11 = vsyncpa [#allocation6], 0 }
   0x2   :  { %12 = vsyncpa [#allocation9], 0 }
   0x3   :  { %13 = vsyncpa [#allocation4], 0  ;;  %s488_s18 = smov [#allocation5]  }
   0x4   :  { %s30_s19 = sshll.u32 %s488_s18, 4  ;;  %s31_s19 = int_to_ptr.vmem [resolvable:$true] %s30_s19 }
   0x5   :  { %s368_s20 = scalar_lea.vmem %s31_s19, 64  ;;  %p373_p1 = scmp.lt.s32.totalorder %s31_s19, %s31_s19 }
   0x6   :  { %p369_p0 = scmp.ne.s32.totalorder %s31_s19, %s368_s20  ;;  %p374_p2 = scmp.lt.s32.totalorder %s368_s20, %s368_s20 }
   0x8   :  { %p375_p3 = por %p374_p2, %p373_p1 }
   0xa   :  { %p376_p4 = pnand %p375_p3, %p369_p0 }
   0xc   :  { %379 = shalt.err (!%p376_p4)
}
   0xd   :  { %33 = dma.hbm_to_vmem [thread:$0]  %s551_s1, 64, %s31_s19, [#allocation6]  }
   0xe   :  { %s489_s23 = smov [#allocation8]   ;;  %s490_s25 = smov [#allocation2]  }
   0xf   :  { %s51_s24 = sshll.u32 %s489_s23, 4  ;;  %s20_s26 = sshll.u32 %s490_s25, 4  ;;  %s52_s24 = int_to_ptr.vmem [resolvable:$true] %s51_s24  ;;  %s21_s26 = int_to_ptr.vmem [resolvable:$true] %s20_s26 }
  0x10   :  { %s388_s27 = scalar_lea.vmem %s52_s24, 256  ;;  %p393_p6 = scmp.lt.s32.totalorder %s52_s24, %s52_s24 }
  0x11   :  { %p389_p5 = scmp.ne.s32.totalorder %s52_s24, %s388_s27  ;;  %p394_p7 = scmp.lt.s32.totalorder %s388_s27, %s388_s27 }
  0x13   :  { %p395_p8 = por %p394_p7, %p393_p6 }
  0x15   :  { %p396_p9 = pnand %p395_p8, %p389_p5 }
  0x17   :  { %399 = shalt.err (!%p396_p9)
}
  0x18   :  { %s491_s28 = smov 64   ;;  %s492_s29 = smov 4  }
  0x19   :  { %57 = dma.hbm_to_vmem [thread:$0]  %s553_s3, 256, %s52_s24, [#allocation9], %s491_s28, %s491_s28, %s492_s29  }
  0x1a   :  { %s408_s1 = scalar_lea.vmem %s21_s26, 128  ;;  %p413_p11 = scmp.lt.s32.totalorder %s21_s26, %s21_s26 }
  0x1b   :  { %p409_p10 = scmp.ne.s32.totalorder %s21_s26, %s408_s1  ;;  %p414_p12 = scmp.lt.s32.totalorder %s408_s1, %s408_s1 }
  0x1d   :  { %p415_p13 = por %p414_p12, %p413_p11 }
  0x1f   :  { %p416_p0 = pnand %p415_p13, %p409_p10 }
  0x21   :  { %419 = shalt.err (!%p416_p0)
}
  0x22   :  { %23 = dma.hbm_to_vmem [thread:$0]  %s550_s0, 128, %s21_s26, [#allocation3]  }
  0x23   :  { %s493_s9 = smov [#allocation7]   ;;  %s494_s11 = smov [#allocation10]  }
  0x24   :  { %s39_s10 = sshll.u32 %s493_s9, 4  ;;  %s64_s12 = sshll.u32 %s494_s11, 4  ;;  %s40_s10 = int_to_ptr.vmem [resolvable:$true] %s39_s10  ;;  %s65_s12 = int_to_ptr.vmem [resolvable:$true] %s64_s12 }
  0x25   :  { %s428_s13 = scalar_lea.vmem %s40_s10, 256  ;;  %p433_p2 = scmp.lt.s32.totalorder %s40_s10, %s40_s10 }
  0x26   :  { %p429_p1 = scmp.ne.s32.totalorder %s40_s10, %s428_s13  ;;  %p434_p3 = scmp.lt.s32.totalorder %s428_s13, %s428_s13 }
  0x28   :  { %p435_p4 = por %p434_p3, %p433_p2 }
  0x2a   :  { %p436_p5 = pnand %p435_p4, %p429_p1 }
  0x2c   :  { %439 = shalt.err (!%p436_p5)
}
  0x2d   :  { %45 = dma.hbm_to_vmem [thread:$0]  %s552_s2, 256, %s40_s10, [#allocation6], %s491_s28, %s491_s28, %s492_s29  }
  0x2e   :  { %s448_s15 = scalar_lea.vmem %s65_s12, 128  ;;  %p453_p7 = scmp.lt.s32.totalorder %s65_s12, %s65_s12 }
  0x2f   :  { %p449_p6 = scmp.ne.s32.totalorder %s65_s12, %s448_s15  ;;  %p454_p8 = scmp.lt.s32.totalorder %s448_s15, %s448_s15 }
  0x31   :  { %p455_p9 = por %p454_p8, %p453_p7 }
  0x33   :  { %p456_p10 = pnand %p455_p9, %p449_p6 }
  0x35   :  { %459 = shalt.err (!%p456_p10)
}
  0x36   :  { %67 = dma.hbm_to_vmem [thread:$0]  %s554_s4, 128, %s65_s12, [#allocation9]  }
  0x37   :  { %480 = dma.done.wait [#allocation3], 128  }
  0x38   :  { %481 = vsyncadd [#allocation3], 4294967168 }
  0x39   :  { %482 = dma.done.wait [#allocation6], 320  }
  0x3a   :  { %483 = vsyncadd [#allocation6], 4294966976 }
  0x3b   :  { %484 = dma.done.wait [#allocation9], 384  }
  0x3c   :  { %485 = vsyncadd [#allocation9], 4294966912  ;;  %vm96_vm0 = vcmask 1042432   ;;  %v495_v0 = vmov 0.0   ;;  %vm97_vm1 = vcmask 1043456   ;;  %v496_v1 = vmov 65535  }
  0x3d   :  { %322 = vmatprep.subr.bf16.mxu0 %v495_v0  ;;  %328 = vmatprep.subr.bf16.mxu1 %v495_v0  ;;  %v98_v2 = vsel %vm96_vm0, 4294967295, %v496_v1  ;;  %vm497_vm2 = vmmov 0   ;;  %v87_v4 = vld [vmem:[#allocation5] sm:$0xf]  ;;  %v84_v5 = vld [vmem:[#allocation2] sm:$0xff]  ;;  %vm92_vm3 = vcmask 56320   ;;  %v88_v10 = vlaneseq }
  0x3e   :  { %324 = vmatprep.mubr.msk.bf16.mxu0 %vm497_vm2, %v495_v0  ;;  %332 = vmatprep.mubr.msk.bf16.mxu1 %vm497_vm2, %v495_v0  ;;  %v99_v3 = vsel %vm97_vm1, %v98_v2, 0  ;;  %v85_v7 = vpack.c.bf16 %v84_v5, %v84_v5  ;;  %v356_v8 = vld [vmem:[#allocation7 + $0x8] sm:$0xff]   ;;  %v357_v9 = vld [vmem:[#allocation7] sm:$0xff]   ;;  %vm165_vm4 = vcmask 261120   ;;  %v358_v22 = vld [vmem:[#allocation8 + $0x8] sm:$0xff]   ;;  %s498_s2 = smov 124  }
  0x3f   :  { %v101_v6 = vand.u32 %v99_v3, %v87_v4  ;;  %329 = vmatpush3.bf16.msra.mxu1 %v356_v8  ;;  %v89_v11 = vshrl.u32 %v88_v10, 7  ;;  %v86_v13 = vld [vmem:[#allocation10] sm:$0xff]  ;;  %v359_v23 = vld [vmem:[#allocation8] sm:$0xff]   ;;  %s499_s4 = smov [#allocation11]   ;;  %vm286_vm5 = vcmask 1044448  }
  0x40   :  { %330 = vmatprep.subr.bf16.mxu1 %v495_v0  ;;  %s294_s17 = sshll.u32 %s499_s4, 4  ;;  %s295_s17 = int_to_ptr.vmem [resolvable:$true] %s294_s17 }
  0x41   :  { %323 = vmatpush3.bf16.msra.mxu0 %v101_v6  ;;  %v90_v12 = vsub.s32 0, %v89_v11  ;;  %v151_v24 = vsub.s32 1, %v89_v11  ;;  %v217_v35 = vsub.s32 2, %v89_v11  ;;  %s460_s18 = scalar_lea.vmem %s295_s17, 64  ;;  %p465_p12 = scmp.lt.s32.totalorder %s295_s17, %s295_s17 }
  0x42   :  { %336 = vmatprep.subr.bf16.mxu0 %v495_v0  ;;  %p461_p11 = scmp.ne.s32.totalorder %s295_s17, %s460_s18  ;;  %p466_p13 = scmp.lt.s32.totalorder %s460_s18, %s460_s18 }
  0x43   :  { %331 = vmatpush3.bf16.msra.mxu1 %v357_v9  ;;  %v91_v14 = vrot.slane %v86_v13, %v90_v12  ;;  %v152_v25 = vrot.slane %v86_v13, %v151_v24  ;;  %v218_v36 = vrot.slane %v86_v13, %v217_v35 }
  0x44   :  { %325 = vmatmul.mubr.msk.bf16.vlgmr.msra.gmra.mxu0 %vm92_vm3, %v85_v7  ;;  %p467_p0 = por %p466_p13, %p465_p12 }
  0x45   :  { %340 = vmatprep.mubr.msk.bf16.mxu0 %vm497_vm2, %v495_v0  ;;  %337 = vmatpush3.bf16.msra.mxu0 %v358_v22 }
  0x46   :  { %338 = vmatprep.subr.bf16.mxu0 %v495_v0  ;;  %p468_p1 = pnand %p467_p0, %p461_p11 }
  0x49   :  { %339 = vmatpush3.bf16.msra.mxu0 %v359_v23 }
 0x104   :  { %v137_v15 = vpop.f32.mrf.mxu0 }
 0x105   :  { %v138_v16 = vadd.f32 %v137_v15, %v91_v14 }
 0x106   :  { %v326_v17 = vpop.f32.mrf.mxu0 }
 0x107   :  { %v143_v18 = vmax.f32 %v138_v16, 0.0 }
 0x108   :  { %v140_v19 = vpop.f32.mrf.mxu0 }
 0x109   :  { %v144_v20 = vpack.c.bf16 %v143_v18, %v143_v18 }
 0x10a   :  { %v327_v21 = vpop.f32.mrf.mxu0 }
 0x10b   :  { %333 = vmatmul.mubr.msk.bf16.vlgmr.msra.gmra.mxu1 %vm165_vm4, %v144_v20 }
 0x1cb   :  { %v203_v26 = vpop.f32.mrf.mxu1 }
 0x1cc   :  { %v204_v27 = vadd.f32 %v203_v26, %v152_v25 }
 0x1cd   :  { %v334_v28 = vpop.f32.mrf.mxu1 }
 0x1ce   :  { %v209_v29 = vmax.f32 %v204_v27, 0.0  ;;  %v313_v33 = vpack.c.bf16 %v204_v27, %v204_v27 }
 0x1cf   :  { %v206_v30 = vpop.f32.mrf.mxu1 }
 0x1d0   :  { %v210_v31 = vpack.c.bf16 %v209_v29, %v209_v29 }
 0x1d1   :  { %v335_v32 = vpop.f32.mrf.mxu1 }
 0x1d2   :  { %220 = vrot.lane.b32.xlu0 %v210_v31, %s498_s2 }
 0x1d6   :  { %283 = vrot.lane.b32.xlu0 %v313_v33, %s498_s2 }
 0x244   :  { %v221_v34 = vpop.permute.xlu0 %220 }
 0x245   :  { %341 = vmatmul.mubr.msk.bf16.vlgmr.msra.gmra.mxu0 %vm165_vm4, %v221_v34 }
 0x248   :  { %v284_v42 = vpop.permute.xlu0 %283 }
 0x305   :  { %v271_v37 = vpop.f32.mrf.mxu0 }
 0x306   :  { %v272_v38 = vadd.f32 %v271_v37, %v218_v36 }
 0x307   :  { %v342_v39 = vpop.f32.mrf.mxu0 }
 0x308   :  { %v277_v40 = vpack.c.bf16 %v272_v38, %v272_v38 }
 0x309   :  { %v274_v41 = vpop.f32.mrf.mxu0 }
 0x30a   :  { %278 = vst [vmem:[#allocation11] sm:$0xf] %v277_v40 }
 0x30b   :  { %v343_v43 = vpop.f32.mrf.mxu0  ;;  %287 = vst.msk [vmem:[#allocation11] sm:$0xf] %vm286_vm5, %v284_v42 }
 0x30c   :  { %471 = shalt.err (!%p468_p1)
}
 0x30d   :  { %297 = dma.vmem_to_hbm [thread:$0]  %s295_s17, 64, %s555_s5, [#allocation4]  }
 0x30e   :  { %486 = dma.done.wait [#allocation4], 64  }
 0x30f   :  { %487 = vsyncadd [#allocation4], 4294967232 }
 0x310   :  { %301 = vsyncpa [#allocation3], 1 }
 0x311   :  { %302 = vsyncpa [#allocation6], 1 }
 0x312   :  { %303 = vsyncpa [#allocation9], 1 }
 0x313   :  { %304 = vsyncpa [#allocation4], 1 }

</bundles_post_ra>
